<compile_context>
chip_gen: v7x
topology: tpu7x:2x2x1
jax: 0.10.0
libtpu: 0.0.40
codegen_flags: <defaults>
</compile_context>

<pallas_src>
import functools
import math

import jax
import jax.numpy as jnp
from jax.experimental import pallas as pl
from jax.experimental.pallas import tpu as pltpu

_MASK_BIAS = -1e30  # finite "-inf": masked logits underflow to exactly 0 after exp


def _layer_norm(y, gamma, beta, eps=1e-5):
    mean = jnp.mean(y, axis=-1, keepdims=True)
    var = jnp.mean((y - mean) ** 2, axis=-1, keepdims=True)
    return (y - mean) * jax.lax.rsqrt(var + eps) * gamma + beta


# ----------------------------------------------------------------------------------
# Kernel
# ----------------------------------------------------------------------------------
def encoder_layer_kernel(
    x_ref, bias_ref, k_ref, v_ref,
    wq_ref, bq_ref, wo_ref, bo_ref, g1_ref, be1_ref,
    wl_ref, bl_ref, wf_ref, bf_ref, g2_ref, be2_ref,
    out_ref,
    a_scr, acc_scr,
    *, n_head: int, head_dim: int, approx_softmax: bool,
):
    cdt = wq_ref.dtype                      # MXU dtype (bf16)
    tq = out_ref.shape[1]
    H = out_ref.shape[2]
    hd = head_dim
    # matches torch: score / (sqrt(dk) + 1e-8); folded into q once.
    scale = 1.0 / (math.sqrt(hd) + 1e-8)

    f_idx = pl.program_id(2)

    # ---- attention + first residual/LayerNorm: once per (batch, query-tile) ----
    @pl.when(f_idx == 0)
    def _():
        x_tile = x_ref[0]                                                  # (tq, H) f32
        q = jnp.dot(x_tile.astype(cdt), wq_ref[...],
                    preferred_element_type=jnp.float32) + bq_ref[0]
        q = (q * scale).astype(cdt)
        # head split: one reshape + one relayout (no per-head slice/stack loop)
        q3 = jnp.swapaxes(q.reshape(tq, n_head, hd), 0, 1)                 # (nh, tq, hd)

        scores = jnp.einsum('hqd,hkd->hqk', q3, k_ref[0],
                            preferred_element_type=jnp.float32)            # (nh, tq, S)
        scores = scores + bias_ref[0].astype(jnp.float32)[None, :, :]      # additive mask
        m = jnp.max(scores, axis=-1, keepdims=True)
        p = jnp.exp(scores - m)
        denom = jnp.sum(p, axis=-1, keepdims=True)
        if approx_softmax:
            p = p * pl.reciprocal(denom, approx=True)                      # EUP slot
        else:
            p = p / denom
        ctx = jnp.einsum('hqk,hkd->hqd', p.astype(cdt), v_ref[0],
                         preferred_element_type=jnp.float32)               # (nh, tq, hd)
        context = jnp.swapaxes(ctx, 0, 1).reshape(tq, H)                   # head merge

        o = jnp.dot(context.astype(cdt), wo_ref[...],
                    preferred_element_type=jnp.float32) + bo_ref[0]
        a_scr[...] = _layer_norm(x_tile + o, g1_ref[0], be1_ref[0])
        acc_scr[...] = jnp.zeros_like(acc_scr)

    # ---- position-wise FFN, tiled over dff chunks (reduction axis of the grid) ----
    a = a_scr[...]
    h1 = jnp.maximum(
        jnp.dot(a.astype(cdt), wl_ref[...], preferred_element_type=jnp.float32)
        + bl_ref[0], 0.0)
    acc_scr[...] += jnp.dot(h1.astype(cdt), wf_ref[...],
                            preferred_element_type=jnp.float32)

    @pl.when(f_idx == pl.num_programs(2) - 1)
    def _():
        out_ref[0] = _layer_norm(a + acc_scr[...] + bf_ref[0],
                                 g2_ref[0], be2_ref[0]).astype(out_ref.dtype)


# ----------------------------------------------------------------------------------
# Sizing / capability helpers
# ----------------------------------------------------------------------------------
def _pad_up(n: int, m: int) -> int:
    return ((n + m - 1) // m) * m


def _tile_bytes(shape, itemsize: int) -> int:
    """VMEM footprint of one buffer with trailing dims padded to the (8,128) vreg tile."""
    if len(shape) == 1:
        return _pad_up(shape[0], 128) * itemsize
    lead = 1
    for d in shape[:-2]:
        lead *= d
    return lead * _pad_up(shape[-2], 8) * _pad_up(shape[-1], 128) * itemsize


def _device_vmem_bytes() -> int:
    try:
        return int(pltpu.get_tpu_info().vmem_capacity_bytes)
    except Exception:
        return 64 * 2**20   # conservative default (v7x per-core VMEM)


@functools.lru_cache(maxsize=1)
def _single_buffer_supported() -> bool:
    """One-time feature probe: does this jax/Mosaic accept pipeline_mode=pl.Buffered(1)?"""
    if not hasattr(pl, "Buffered"):
        return False
    try:
        spec = pl.BlockSpec((8, 128), lambda i: (0, 0), pipeline_mode=pl.Buffered(1))

        def _copy(x_ref, o_ref):
            o_ref[...] = x_ref[...]

        fn = pl.pallas_call(
            _copy,
            out_shape=jax.ShapeDtypeStruct((8, 128), jnp.float32),
            grid=(1,),
            in_specs=[spec],
            out_specs=pl.BlockSpec((8, 128), lambda i: (0, 0)),
        )
        jax.jit(fn).lower(jnp.zeros((8, 128), jnp.float32)).compile()
        return True
    except Exception:
        return False


def _pick_block_q(S: int, n_head: int, vmem_cap: int, max_block: int = 256) -> int:
    """Largest divisor of S (<= max_block, multiple of 8 where possible) whose f32
    scores/probs working set fits in a fraction of device VMEM."""
    if S <= max_block:
        cands = [S]
    else:
        cands = [b for b in range(max_block, 7, -1) if S % b == 0 and b % 8 == 0] or [S]
    budget = vmem_cap // 4
    for b in cands:
        if 3 * n_head * _pad_up(b, 8) * _pad_up(S, 128) * 4 <= budget:
            return b
    return cands[-1]


def _pick_block_ff(dff: int, max_block: int = 512) -> int:
    if dff <= max_block:
        return dff
    for b in range(max_block, 127, -128):
        if dff % b == 0:
            return b
    return dff


# ----------------------------------------------------------------------------------
# Wrapper
# ----------------------------------------------------------------------------------
def encoder_layer(x, mask, params, *, n_head: int, block_q=None, block_ff=None,
                  compute_dtype=jnp.bfloat16, approx_softmax: bool = True):
    """Fused transformer encoder layer forward pass.

    x:    [B, S, H] float32
    mask: [B, 1, S, S] int (nonzero => position is masked)
    Returns a lazy [B, S, H] float32 array (caller syncs / jits).
    """
    B, S, H = x.shape
    assert H % n_head == 0
    hd = H // n_head
    dff = params["wl"].shape[1]

    wdt = jax.dtypes.canonicalize_dtype(compute_dtype)
    wbytes = jnp.dtype(wdt).itemsize

    vmem_cap = _device_vmem_bytes()
    if block_q is None:
        block_q = _pick_block_q(S, n_head, vmem_cap)
    assert S % block_q == 0
    n_seq = S // block_q
    if block_ff is None:
        block_ff = _pick_block_ff(dff)
    assert dff % block_ff == 0
    n_ff = dff // block_ff

    # --- hoisted K/V projections: plain XLA GEMMs, passed in pre-split per head ---
    k = (x @ params["wk"] + params["bk"][0]).reshape(B, S, n_head, hd)
    v = (x @ params["wv"] + params["bv"][0]).reshape(B, S, n_head, hd)
    k_heads = jnp.transpose(k, (0, 2, 1, 3)).astype(wdt)        # (B, nh, S, hd)
    v_heads = jnp.transpose(v, (0, 2, 1, 3)).astype(wdt)

    # Additive mask bias in bf16: halves the B*S^2 HBM stream vs f32, one add in-kernel.
    # Fully-masked rows degrade to uniform attention instead of torch's NaN.
    attn_bias = jnp.where(mask[:, 0, :, :] != 0, _MASK_BIAS, 0.0).astype(jnp.bfloat16)

    wq = params["wq"].astype(wdt); wo = params["wo"].astype(wdt)
    wl = params["wl"].astype(wdt); wf = params["wf"].astype(wdt)

    kernel = functools.partial(encoder_layer_kernel, n_head=n_head, head_dim=hd,
                               approx_softmax=approx_softmax)

    single = _single_buffer_supported()
    ff_single = (n_ff == 1)   # single dff chunk => its block index is constant too

    def const_spec(shape, index_map=None, single_ok=True):
        idx = index_map if index_map is not None else (lambda b, s, f: (0,) * len(shape))
        if single and single_ok:
            return pl.BlockSpec(shape, idx, pipeline_mode=pl.Buffered(1))
        return pl.BlockSpec(shape, idx)

    in_specs = [
        pl.BlockSpec((1, block_q, H), lambda b, s, f: (b, s, 0)),          # x query tile
        pl.BlockSpec((1, block_q, S), lambda b, s, f: (b, s, 0)),          # mask bias (bf16)
        pl.BlockSpec((1, n_head, S, hd), lambda b, s, f: (b, 0, 0, 0)),    # K (per batch)
        pl.BlockSpec((1, n_head, S, hd), lambda b, s, f: (b, 0, 0, 0)),    # V (per batch)
        const_spec((H, H)), const_spec((1, H)),                            # wq, bq
        const_spec((H, H)), const_spec((1, H)),                            # wo, bo
        const_spec((1, H)), const_spec((1, H)),                            # ln1 gamma, beta
        const_spec((H, block_ff), lambda b, s, f: (0, f), single_ok=ff_single),  # wl chunk
        const_spec((1, block_ff), lambda b, s, f: (0, f), single_ok=ff_single),  # bl chunk
        const_spec((block_ff, H), lambda b, s, f: (f, 0), single_ok=ff_single),  # wf chunk
        const_spec((1, H)),                                                # bf
        const_spec((1, H)), const_spec((1, H)),                            # ln2 gamma, beta
    ]

    # --- VMEM budget (generation-aware clamp) ---
    w_bufs = 1 if single else 2
    ff_bufs = 1 if (single and ff_single) else 2
    vmem_est = (
        2 * _tile_bytes((block_q, H), 4)                  # x blocks (double buffered)
        + 2 * _tile_bytes((block_q, S), 2)                # mask-bias blocks
        + 2 * 2 * _tile_bytes((n_head, S, hd), wbytes)    # K and V blocks
        + 2 * _tile_bytes((block_q, H), 4)                # output blocks
        + w_bufs * (2 * _tile_bytes((H, H), wbytes) + 7 * _tile_bytes((H,), 4))
        + ff_bufs * (_tile_bytes((H, block_ff), wbytes)
                     + _tile_bytes((block_ff, H), wbytes)
                     + _tile_bytes((block_ff,), 4))
        + 2 * _tile_bytes((block_q, H), 4)                # a_scr + acc_scr
        + 4 * _tile_bytes((n_head, block_q, S), 4)        # scores / probs temporaries
        + 4 * _tile_bytes((n_head, block_q, hd), 4)       # q3 / ctx temporaries
        + 2 * _tile_bytes((block_q, block_ff), 4)         # FFN hidden chunk
        + 6 * _tile_bytes((block_q, H), 4)                # misc elementwise temps
    )
    headroom = 4 * 2**20
    vmem_limit = int(min(vmem_cap - headroom, max(32 * 2**20, int(vmem_est * 1.4))))

    # --- advisory cost estimate ---
    flops = 4 * B * S * H * H + 4 * B * S * S * H + 4 * B * S * H * dff
    transcendentals = B * n_head * S * S + 4 * B * S
    bytes_accessed = (
        B * S * H * 4 + B * S * S * 2 + 2 * B * n_head * S * hd * wbytes
        + B * S * H * 4 + 2 * H * H * wbytes
        + B * n_seq * 2 * H * dff * wbytes + (7 * H + dff) * 4)
    cost = pl.CostEstimate(flops=int(flops), transcendentals=int(transcendentals),
                           bytes_accessed=int(bytes_accessed))

    out = pl.pallas_call(
        kernel,
        out_shape=jax.ShapeDtypeStruct((B, S, H), jnp.float32),
        grid_spec=pltpu.PrefetchScalarGridSpec(
            num_scalar_prefetch=0,
            grid=(B, n_seq, n_ff),
            in_specs=in_specs,
            out_specs=pl.BlockSpec((1, block_q, H), lambda b, s, f: (b, s, 0)),
            scratch_shapes=[
                pltpu.VMEM((block_q, H), jnp.float32),    # a = LN(x + attn_out)
                pltpu.VMEM((block_q, H), jnp.float32),    # FFN accumulator over dff chunks
            ],
        ),
        compiler_params=pltpu.CompilerParams(
            dimension_semantics=("parallel", "parallel", "arbitrary"),
            vmem_limit_bytes=int(vmem_limit)),
        cost_estimate=cost,
    )(
        x, attn_bias, k_heads, v_heads,
        wq, params["bq"], wo, params["bo"], params["g1"], params["be1"],
        wl, params["bl"], wf, params["bf"], params["g2"], params["be2"],
    )
    return out


# ----------------------------------------------------------------------------------
# Pure-JAX reference + params + demo
# ----------------------------------------------------------------------------------
def encoder_layer_reference(x, mask, params, *, n_head):
    """Pure-JAX f32 reference mirroring the PyTorch module (eval mode)."""
    B, S, H = x.shape
    hd = H // n_head
    scale = 1.0 / (math.sqrt(hd) + 1e-8)

    def lin(t, w, b):
        return t @ w + b[0]

    q = lin(x, params["wq"], params["bq"])
    k = lin(x, params["wk"], params["bk"])
    v = lin(x, params["wv"], params["bv"])

    def split(t):                                    # (B,S,H) -> (B,nh,S,hd)
        return t.reshape(B, S, n_head, hd).transpose(0, 2, 1, 3)

    qh, kh, vh = split(q), split(k), split(v)
    scores = jnp.einsum('bhqd,bhkd->bhqk', qh, kh) * scale
    bias = jnp.where(mask != 0, _MASK_BIAS, 0.0)     # (B,1,S,S), broadcasts over heads
    p = jax.nn.softmax(scores + bias, axis=-1)
    ctx = jnp.einsum('bhqk,bhkd->bhqd', p, vh)
    ctx = ctx.transpose(0, 2, 1, 3).reshape(B, S, H)
    a = _layer_norm(x + lin(ctx, params["wo"], params["bo"]),
                    params["g1"][0], params["be1"][0])
    h1 = jax.nn.relu(lin(a, params["wl"], params["bl"]))
    return _layer_norm(a + lin(h1, params["wf"], params["bf"]),
                       params["g2"][0], params["be2"][0])


def make_params(key, num_hiddens):
    H = num_hiddens
    dff = 4 * H
    ks = jax.random.split(key, 12)
    s = 0.05

    def mat(k, shape):
        return jax.random.normal(k, shape, jnp.float32) * s

    return {
        # linear weights stored as (in, out): y = x @ W + b
        "wq": mat(ks[0], (H, H)), "bq": mat(ks[1], (1, H)),
        "wk": mat(ks[2], (H, H)), "bk": mat(ks[3], (1, H)),
        "wv": mat(ks[4], (H, H)), "bv": mat(ks[5], (1, H)),
        "wo": mat(ks[6], (H, H)), "bo": mat(ks[7], (1, H)),
        "g1": jnp.ones((1, H), jnp.float32), "be1": jnp.zeros((1, H), jnp.float32),
        "wl": mat(ks[8], (H, dff)), "bl": mat(ks[9], (1, dff)),
        "wf": mat(ks[10], (dff, H)), "bf": mat(ks[11], (1, H)),
        "g2": jnp.ones((1, H), jnp.float32), "be2": jnp.zeros((1, H), jnp.float32),
    }


if __name__ == "__main__":
    batch_size, num_steps, num_hiddens, n_head = 2, 8, 32, 2

    key = jax.random.PRNGKey(0)
    kx, km, kp = jax.random.split(key, 3)

    x = jax.random.normal(kx, (batch_size, num_steps, num_hiddens), jnp.float32)
    # 0/1 mask, matching torch.randint(0, 2, (B, 1, S, S)); nonzero => masked
    mask = jax.random.randint(km, (batch_size, 1, num_steps, num_steps), 0, 2,
                              dtype=jnp.int32)
    params = make_params(kp, num_hiddens)

    out = jax.block_until_ready(encoder_layer(x, mask, params, n_head=n_head))
    assert out.shape == (batch_size, num_steps, num_hiddens)
    assert bool(jnp.all(jnp.isfinite(out)))

    ref = encoder_layer_reference(x, mask, params, n_head=n_head)
    max_err = float(jnp.max(jnp.abs(out - ref)))
    assert max_err < 1e-1, f"kernel deviates from reference: max_err={max_err}"

    print("KERNEL_OK")
</pallas_src>

<mosaic_0001>
module attributes {stable_mosaic.version = 11 : i64} {
  func.func @encoder_layer_kernel(%arg0: i32, %arg1: i32, %arg2: i32, %arg3: memref<1x8x32xf32, #tpu.memory_space<vmem>>, %arg4: memref<1x8x8xbf16, #tpu.memory_space<vmem>>, %arg5: memref<1x2x8x16xbf16, #tpu.memory_space<vmem>>, %arg6: memref<1x2x8x16xbf16, #tpu.memory_space<vmem>>, %arg7: memref<32x32xbf16, #tpu.memory_space<vmem>>, %arg8: memref<1x32xf32, #tpu.memory_space<vmem>>, %arg9: memref<32x32xbf16, #tpu.memory_space<vmem>>, %arg10: memref<1x32xf32, #tpu.memory_space<vmem>>, %arg11: memref<1x32xf32, #tpu.memory_space<vmem>>, %arg12: memref<1x32xf32, #tpu.memory_space<vmem>>, %arg13: memref<32x128xbf16, #tpu.memory_space<vmem>>, %arg14: memref<1x128xf32, #tpu.memory_space<vmem>>, %arg15: memref<128x32xbf16, #tpu.memory_space<vmem>>, %arg16: memref<1x32xf32, #tpu.memory_space<vmem>>, %arg17: memref<1x32xf32, #tpu.memory_space<vmem>>, %arg18: memref<1x32xf32, #tpu.memory_space<vmem>>, %arg19: memref<1x8x32xf32, #tpu.memory_space<vmem>>, %arg20: memref<8x32xf32, #tpu.memory_space<vmem>>, %arg21: memref<8x32xf32, #tpu.memory_space<vmem>>) attributes {dimension_semantics = [#tpu.dimension_semantics<parallel>, #tpu.dimension_semantics<parallel>, #tpu.dimension_semantics<arbitrary>], iteration_bounds = array<i64: 2, 1, 1>, scalar_prefetch = 0 : i64, scratch_operands = 2 : i64, tpu.core_type = #tpu.core_type<tc>, window_params = [{transform_indices = @transform_0, window_bounds = array<i64: 1, 8, 32>}, {transform_indices = @transform_1, window_bounds = array<i64: 1, 8, 8>}, {transform_indices = @transform_2, window_bounds = array<i64: 1, 2, 8, 16>}, {transform_indices = @transform_3, window_bounds = array<i64: 1, 2, 8, 16>}, {pipeline_mode = #tpu.pipeline_mode<synchronous>, transform_indices = @transform_4, window_bounds = array<i64: 32, 32>}, {pipeline_mode = #tpu.pipeline_mode<synchronous>, transform_indices = @transform_5, window_bounds = array<i64: 1, 32>}, {pipeline_mode = #tpu.pipeline_mode<synchronous>, transform_indices = @transform_6, window_bounds = array<i64: 32, 32>}, {pipeline_mode = #tpu.pipeline_mode<synchronous>, transform_indices = @transform_7, window_bounds = array<i64: 1, 32>}, {pipeline_mode = #tpu.pipeline_mode<synchronous>, transform_indices = @transform_8, window_bounds = array<i64: 1, 32>}, {pipeline_mode = #tpu.pipeline_mode<synchronous>, transform_indices = @transform_9, window_bounds = array<i64: 1, 32>}, {transform_indices = @transform_10, window_bounds = array<i64: 32, 128>}, {transform_indices = @transform_11, window_bounds = array<i64: 1, 128>}, {transform_indices = @transform_12, window_bounds = array<i64: 128, 32>}, {pipeline_mode = #tpu.pipeline_mode<synchronous>, transform_indices = @transform_13, window_bounds = array<i64: 1, 32>}, {pipeline_mode = #tpu.pipeline_mode<synchronous>, transform_indices = @transform_14, window_bounds = array<i64: 1, 32>}, {pipeline_mode = #tpu.pipeline_mode<synchronous>, transform_indices = @transform_15, window_bounds = array<i64: 1, 32>}, {transform_indices = @transform_16, window_bounds = array<i64: 1, 8, 32>}]} {
    %c0_i32 = arith.constant 0 : i32
    %0 = arith.cmpi eq, %arg2, %c0_i32 : i32
    %1 = arith.extui %0 : i1 to i32
    %c0_i32_0 = arith.constant 0 : i32
    %2 = arith.cmpi ne, %1, %c0_i32_0 : i32
    scf.if %2 {
      %c0_16 = arith.constant 0 : index
      %c0_17 = arith.constant 0 : index
      %c0_18 = arith.constant 0 : index
      %23 = vector.load %arg3[%c0_16, %c0_17, %c0_18] : memref<1x8x32xf32, #tpu.memory_space<vmem>>, vector<1x8x32xf32>
      %24 = vector.shape_cast %23 : vector<1x8x32xf32> to vector<8x32xf32>
      %25 = arith.truncf %24 : vector<8x32xf32> to vector<8x32xbf16>
      %c0_19 = arith.constant 0 : index
      %c0_20 = arith.constant 0 : index
      %26 = vector.load %arg7[%c0_19, %c0_20] : memref<32x32xbf16, #tpu.memory_space<vmem>>, vector<32x32xbf16>
      %cst_21 = arith.constant dense<0.000000e+00> : vector<8x32xf32>
      %27 = tpu.matmul %25, %26, %cst_21 {dimension_numbers = #tpu.dot_dimension_numbers<[1], [0], [0], [1], [0, 0, 1, 1], [], []>} : vector<8x32xbf16>, vector<32x32xbf16>, vector<8x32xf32> -> vector<8x32xf32>
      %c0_22 = arith.constant 0 : index
      %c0_23 = arith.constant 0 : index
      %28 = vector.load %arg8[%c0_22, %c0_23] : memref<1x32xf32, #tpu.memory_space<vmem>>, vector<1x32xf32>
      %29 = vector.shape_cast %28 : vector<1x32xf32> to vector<32xf32>
      %30 = vector.shape_cast %29 : vector<32xf32> to vector<1x32xf32>
      %31 = vector.broadcast %30 : vector<1x32xf32> to vector<8x32xf32>
      %32 = arith.addf %27, %31 : vector<8x32xf32>
      %cst_24 = arith.constant 2.500000e-01 : f32
      %33 = vector.broadcast %cst_24 : f32 to vector<8x32xf32>
      %34 = arith.mulf %32, %33 : vector<8x32xf32>
      %35 = arith.truncf %34 : vector<8x32xf32> to vector<8x32xbf16>
      %36 = vector.shape_cast %35 : vector<8x32xbf16> to vector<8x2x16xbf16>
      %37 = tpu.transpose %36, [1, 0, 2] : vector<8x2x16xbf16> -> vector<2x8x16xbf16>
      %c0_25 = arith.constant 0 : index
      %c0_26 = arith.constant 0 : index
      %c0_27 = arith.constant 0 : index
      %c0_28 = arith.constant 0 : index
      %38 = vector.load %arg5[%c0_25, %c0_26, %c0_27, %c0_28] : memref<1x2x8x16xbf16, #tpu.memory_space<vmem>>, vector<1x2x8x16xbf16>
      %39 = vector.shape_cast %38 : vector<1x2x8x16xbf16> to vector<2x8x16xbf16>
      "tpu.trace_start"() <{level = 10 : i32, message = "hqd,hkd->hqk"}> : () -> ()
      %cst_29 = arith.constant dense<0.000000e+00> : vector<2x8x8xf32>
      %40 = tpu.matmul %37, %39, %cst_29 {dimension_numbers = #tpu.dot_dimension_numbers<[2], [2], [1], [1], [0, 0, 0, 1, 1, 1], [0], [0]>} : vector<2x8x16xbf16>, vector<2x8x16xbf16>, vector<2x8x8xf32> -> vector<2x8x8xf32>
      "tpu.trace_stop"() : () -> ()
      %c0_30 = arith.constant 0 : index
      %c0_31 = arith.constant 0 : index
      %c0_32 = arith.constant 0 : index
      %41 = vector.load %arg4[%c0_30, %c0_31, %c0_32] : memref<1x8x8xbf16, #tpu.memory_space<vmem>>, vector<1x8x8xbf16>
      %42 = vector.shape_cast %41 : vector<1x8x8xbf16> to vector<8x8xbf16>
      %43 = arith.extf %42 : vector<8x8xbf16> to vector<8x8xf32>
      %44 = vector.shape_cast %43 : vector<8x8xf32> to vector<1x8x8xf32>
      %45 = vector.broadcast %44 : vector<1x8x8xf32> to vector<2x8x8xf32>
      %46 = arith.addf %40, %45 : vector<2x8x8xf32>
      %cst_33 = arith.constant dense<0xFF800000> : vector<2x8xf32>
      %47 = vector.multi_reduction <maximumf>, %46, %cst_33 [2] : vector<2x8x8xf32> to vector<2x8xf32>
      %48 = vector.shape_cast %47 : vector<2x8xf32> to vector<2x8x1xf32>
      %49 = vector.broadcast %48 : vector<2x8x1xf32> to vector<2x8x8xf32>
      %50 = arith.subf %46, %49 : vector<2x8x8xf32>
      %51 = math.exp %50 : vector<2x8x8xf32>
      %cst_34 = arith.constant dense<0.000000e+00> : vector<2x8xf32>
      %52 = vector.multi_reduction <add>, %51, %cst_34 [2] : vector<2x8x8xf32> to vector<2x8xf32>
      %53 = vector.shape_cast %52 : vector<2x8xf32> to vector<2x8x1xf32>
      %54 = tpu.reciprocal %53 {approx = true} : vector<2x8x1xf32> -> vector<2x8x1xf32>
      %55 = vector.broadcast %54 : vector<2x8x1xf32> to vector<2x8x8xf32>
      %56 = arith.mulf %51, %55 : vector<2x8x8xf32>
      %57 = arith.truncf %56 : vector<2x8x8xf32> to vector<2x8x8xbf16>
      %c0_35 = arith.constant 0 : index
      %c0_36 = arith.constant 0 : index
      %c0_37 = arith.constant 0 : index
      %c0_38 = arith.constant 0 : index
      %58 = vector.load %arg6[%c0_35, %c0_36, %c0_37, %c0_38] : memref<1x2x8x16xbf16, #tpu.memory_space<vmem>>, vector<1x2x8x16xbf16>
      %59 = vector.shape_cast %58 : vector<1x2x8x16xbf16> to vector<2x8x16xbf16>
      "tpu.trace_start"() <{level = 10 : i32, message = "hqk,hkd->hqd"}> : () -> ()
      %cst_39 = arith.constant dense<0.000000e+00> : vector<2x8x16xf32>
      %60 = tpu.matmul %57, %59, %cst_39 {dimension_numbers = #tpu.dot_dimension_numbers<[2], [1], [1], [2], [0, 0, 0, 1, 1, 2], [0], [0]>} : vector<2x8x8xbf16>, vector<2x8x16xbf16>, vector<2x8x16xf32> -> vector<2x8x16xf32>
      "tpu.trace_stop"() : () -> ()
      %61 = tpu.transpose %60, [1, 0, 2] : vector<2x8x16xf32> -> vector<8x2x16xf32>
      %62 = vector.shape_cast %61 : vector<8x2x16xf32> to vector<8x32xf32>
      %63 = arith.truncf %62 : vector<8x32xf32> to vector<8x32xbf16>
      %c0_40 = arith.constant 0 : index
      %c0_41 = arith.constant 0 : index
      %64 = vector.load %arg9[%c0_40, %c0_41] : memref<32x32xbf16, #tpu.memory_space<vmem>>, vector<32x32xbf16>
      %cst_42 = arith.constant dense<0.000000e+00> : vector<8x32xf32>
      %65 = tpu.matmul %63, %64, %cst_42 {dimension_numbers = #tpu.dot_dimension_numbers<[1], [0], [0], [1], [0, 0, 1, 1], [], []>} : vector<8x32xbf16>, vector<32x32xbf16>, vector<8x32xf32> -> vector<8x32xf32>
      %c0_43 = arith.constant 0 : index
      %c0_44 = arith.constant 0 : index
      %66 = vector.load %arg10[%c0_43, %c0_44] : memref<1x32xf32, #tpu.memory_space<vmem>>, vector<1x32xf32>
      %67 = vector.shape_cast %66 : vector<1x32xf32> to vector<32xf32>
      %68 = vector.shape_cast %67 : vector<32xf32> to vector<1x32xf32>
      %69 = vector.broadcast %68 : vector<1x32xf32> to vector<8x32xf32>
      %70 = arith.addf %65, %69 : vector<8x32xf32>
      %71 = arith.addf %24, %70 : vector<8x32xf32>
      %c0_45 = arith.constant 0 : index
      %c0_46 = arith.constant 0 : index
      %72 = vector.load %arg11[%c0_45, %c0_46] : memref<1x32xf32, #tpu.memory_space<vmem>>, vector<1x32xf32>
      %73 = vector.shape_cast %72 : vector<1x32xf32> to vector<32xf32>
      %c0_47 = arith.constant 0 : index
      %c0_48 = arith.constant 0 : index
      %74 = vector.load %arg12[%c0_47, %c0_48] : memref<1x32xf32, #tpu.memory_space<vmem>>, vector<1x32xf32>
      %75 = vector.shape_cast %74 : vector<1x32xf32> to vector<32xf32>
      %cst_49 = arith.constant dense<0.000000e+00> : vector<8xf32>
      %76 = vector.multi_reduction <add>, %71, %cst_49 [1] : vector<8x32xf32> to vector<8xf32>
      %77 = vector.shape_cast %76 : vector<8xf32> to vector<8x1xf32>
      %cst_50 = arith.constant 3.200000e+01 : f32
      %78 = vector.broadcast %cst_50 : f32 to vector<8x1xf32>
      %79 = arith.divf %77, %78 : vector<8x1xf32>
      %80 = vector.broadcast %79 : vector<8x1xf32> to vector<8x32xf32>
      %81 = arith.subf %71, %80 : vector<8x32xf32>
      %82 = arith.mulf %81, %81 : vector<8x32xf32>
      %cst_51 = arith.constant dense<0.000000e+00> : vector<8xf32>
      %83 = vector.multi_reduction <add>, %82, %cst_51 [1] : vector<8x32xf32> to vector<8xf32>
      %84 = vector.shape_cast %83 : vector<8xf32> to vector<8x1xf32>
      %cst_52 = arith.constant 3.200000e+01 : f32
      %85 = vector.broadcast %cst_52 : f32 to vector<8x1xf32>
      %86 = arith.divf %84, %85 : vector<8x1xf32>
      %87 = vector.broadcast %79 : vector<8x1xf32> to vector<8x32xf32>
      %88 = arith.subf %71, %87 : vector<8x32xf32>
      %cst_53 = arith.constant 9.99999974E-6 : f32
      %89 = vector.broadcast %cst_53 : f32 to vector<8x1xf32>
      %90 = arith.addf %86, %89 : vector<8x1xf32>
      %91 = math.rsqrt %90 : vector<8x1xf32>
      %92 = vector.broadcast %91 : vector<8x1xf32> to vector<8x32xf32>
      %93 = arith.mulf %88, %92 : vector<8x32xf32>
      %94 = vector.shape_cast %73 : vector<32xf32> to vector<1x32xf32>
      %95 = vector.broadcast %94 : vector<1x32xf32> to vector<8x32xf32>
      %96 = arith.mulf %93, %95 : vector<8x32xf32>
      %97 = vector.shape_cast %75 : vector<32xf32> to vector<1x32xf32>
      %98 = vector.broadcast %97 : vector<1x32xf32> to vector<8x32xf32>
      %99 = arith.addf %96, %98 : vector<8x32xf32>
      %c0_54 = arith.constant 0 : index
      %c0_55 = arith.constant 0 : index
      %100 = vector.load %arg20[%c0_54, %c0_55] : memref<8x32xf32, #tpu.memory_space<vmem>>, vector<8x32xf32>
      tpu.vector_store %arg20[%c0_54, %c0_55], %99 {strides = array<i32>} : memref<8x32xf32, #tpu.memory_space<vmem>>, vector<8x32xf32>,
      %cst_56 = arith.constant 0.000000e+00 : f32
      %101 = vector.broadcast %cst_56 : f32 to vector<8x32xf32>
      %c0_57 = arith.constant 0 : index
      %c0_58 = arith.constant 0 : index
      %102 = vector.load %arg21[%c0_57, %c0_58] : memref<8x32xf32, #tpu.memory_space<vmem>>, vector<8x32xf32>
      tpu.vector_store %arg21[%c0_57, %c0_58], %101 {strides = array<i32>} : memref<8x32xf32, #tpu.memory_space<vmem>>, vector<8x32xf32>,
    } else {
    }
    %c0 = arith.constant 0 : index
    %c0_1 = arith.constant 0 : index
    %3 = vector.load %arg20[%c0, %c0_1] : memref<8x32xf32, #tpu.memory_space<vmem>>, vector<8x32xf32>
    %4 = arith.truncf %3 : vector<8x32xf32> to vector<8x32xbf16>
    %c0_2 = arith.constant 0 : index
    %c0_3 = arith.constant 0 : index
    %5 = vector.load %arg13[%c0_2, %c0_3] : memref<32x128xbf16, #tpu.memory_space<vmem>>, vector<32x128xbf16>
    %cst = arith.constant dense<0.000000e+00> : vector<8x128xf32>
    %6 = tpu.matmul %4, %5, %cst {dimension_numbers = #tpu.dot_dimension_numbers<[1], [0], [0], [1], [0, 0, 1, 1], [], []>} : vector<8x32xbf16>, vector<32x128xbf16>, vector<8x128xf32> -> vector<8x128xf32>
    %c0_4 = arith.constant 0 : index
    %c0_5 = arith.constant 0 : index
    %7 = vector.load %arg14[%c0_4, %c0_5] : memref<1x128xf32, #tpu.memory_space<vmem>>, vector<1x128xf32>
    %8 = vector.shape_cast %7 : vector<1x128xf32> to vector<128xf32>
    %9 = vector.shape_cast %8 : vector<128xf32> to vector<1x128xf32>
    %10 = vector.broadcast %9 : vector<1x128xf32> to vector<8x128xf32>
    %11 = arith.addf %6, %10 : vector<8x128xf32>
    %cst_6 = arith.constant 0.000000e+00 : f32
    %12 = vector.broadcast %cst_6 : f32 to vector<8x128xf32>
    %13 = arith.maximumf %11, %12 : vector<8x128xf32>
    %c0_7 = arith.constant 0 : index
    %c0_8 = arith.constant 0 : index
    %14 = vector.load %arg21[%c0_7, %c0_8] : memref<8x32xf32, #tpu.memory_space<vmem>>, vector<8x32xf32>
    %15 = arith.truncf %13 : vector<8x128xf32> to vector<8x128xbf16>
    %c0_9 = arith.constant 0 : index
    %c0_10 = arith.constant 0 : index
    %16 = vector.load %arg15[%c0_9, %c0_10] : memref<128x32xbf16, #tpu.memory_space<vmem>>, vector<128x32xbf16>
    %cst_11 = arith.constant dense<0.000000e+00> : vector<8x32xf32>
    %17 = tpu.matmul %15, %16, %cst_11 {dimension_numbers = #tpu.dot_dimension_numbers<[1], [0], [0], [1], [0, 0, 1, 1], [], []>} : vector<8x128xbf16>, vector<128x32xbf16>, vector<8x32xf32> -> vector<8x32xf32>
    %18 = arith.addf %14, %17 : vector<8x32xf32>
    %c0_12 = arith.constant 0 : index
    %c0_13 = arith.constant 0 : index
    %19 = vector.load %arg21[%c0_12, %c0_13] : memref<8x32xf32, #tpu.memory_space<vmem>>, vector<8x32xf32>
    tpu.vector_store %arg21[%c0_12, %c0_13], %18 {strides = array<i32>} : memref<8x32xf32, #tpu.memory_space<vmem>>, vector<8x32xf32>,
    %c0_i32_14 = arith.constant 0 : i32
    %20 = arith.cmpi eq, %arg2, %c0_i32_14 : i32
    %21 = arith.extui %20 : i1 to i32
    %c0_i32_15 = arith.constant 0 : i32
    %22 = arith.cmpi ne, %21, %c0_i32_15 : i32
    scf.if %22 {
      %c0_16 = arith.constant 0 : index
      %c0_17 = arith.constant 0 : index
      %23 = vector.load %arg21[%c0_16, %c0_17] : memref<8x32xf32, #tpu.memory_space<vmem>>, vector<8x32xf32>
      %24 = arith.addf %3, %23 : vector<8x32xf32>
      %c0_18 = arith.constant 0 : index
      %c0_19 = arith.constant 0 : index
      %25 = vector.load %arg16[%c0_18, %c0_19] : memref<1x32xf32, #tpu.memory_space<vmem>>, vector<1x32xf32>
      %26 = vector.shape_cast %25 : vector<1x32xf32> to vector<32xf32>
      %27 = vector.shape_cast %26 : vector<32xf32> to vector<1x32xf32>
      %28 = vector.broadcast %27 : vector<1x32xf32> to vector<8x32xf32>
      %29 = arith.addf %24, %28 : vector<8x32xf32>
      %c0_20 = arith.constant 0 : index
      %c0_21 = arith.constant 0 : index
      %30 = vector.load %arg17[%c0_20, %c0_21] : memref<1x32xf32, #tpu.memory_space<vmem>>, vector<1x32xf32>
      %31 = vector.shape_cast %30 : vector<1x32xf32> to vector<32xf32>
      %c0_22 = arith.constant 0 : index
      %c0_23 = arith.constant 0 : index
      %32 = vector.load %arg18[%c0_22, %c0_23] : memref<1x32xf32, #tpu.memory_space<vmem>>, vector<1x32xf32>
      %33 = vector.shape_cast %32 : vector<1x32xf32> to vector<32xf32>
      %cst_24 = arith.constant dense<0.000000e+00> : vector<8xf32>
      %34 = vector.multi_reduction <add>, %29, %cst_24 [1] : vector<8x32xf32> to vector<8xf32>
      %35 = vector.shape_cast %34 : vector<8xf32> to vector<8x1xf32>
      %cst_25 = arith.constant 3.200000e+01 : f32
      %36 = vector.broadcast %cst_25 : f32 to vector<8x1xf32>
      %37 = arith.divf %35, %36 : vector<8x1xf32>
      %38 = vector.broadcast %37 : vector<8x1xf32> to vector<8x32xf32>
      %39 = arith.subf %29, %38 : vector<8x32xf32>
      %40 = arith.mulf %39, %39 : vector<8x32xf32>
      %cst_26 = arith.constant dense<0.000000e+00> : vector<8xf32>
      %41 = vector.multi_reduction <add>, %40, %cst_26 [1] : vector<8x32xf32> to vector<8xf32>
      %42 = vector.shape_cast %41 : vector<8xf32> to vector<8x1xf32>
      %cst_27 = arith.constant 3.200000e+01 : f32
      %43 = vector.broadcast %cst_27 : f32 to vector<8x1xf32>
      %44 = arith.divf %42, %43 : vector<8x1xf32>
      %45 = vector.broadcast %37 : vector<8x1xf32> to vector<8x32xf32>
      %46 = arith.subf %29, %45 : vector<8x32xf32>
      %cst_28 = arith.constant 9.99999974E-6 : f32
      %47 = vector.broadcast %cst_28 : f32 to vector<8x1xf32>
      %48 = arith.addf %44, %47 : vector<8x1xf32>
      %49 = math.rsqrt %48 : vector<8x1xf32>
      %50 = vector.broadcast %49 : vector<8x1xf32> to vector<8x32xf32>
      %51 = arith.mulf %46, %50 : vector<8x32xf32>
      %52 = vector.shape_cast %31 : vector<32xf32> to vector<1x32xf32>
      %53 = vector.broadcast %52 : vector<1x32xf32> to vector<8x32xf32>
      %54 = arith.mulf %51, %53 : vector<8x32xf32>
      %55 = vector.shape_cast %33 : vector<32xf32> to vector<1x32xf32>
      %56 = vector.broadcast %55 : vector<1x32xf32> to vector<8x32xf32>
      %57 = arith.addf %54, %56 : vector<8x32xf32>
      %c0_29 = arith.constant 0 : index
      %c0_30 = arith.constant 0 : index
      %c0_31 = arith.constant 0 : index
      %58 = vector.load %arg19[%c0_29, %c0_30, %c0_31] : memref<1x8x32xf32, #tpu.memory_space<vmem>>, vector<1x8x32xf32>
      %59 = vector.shape_cast %58 : vector<1x8x32xf32> to vector<8x32xf32>
      %60 = vector.shape_cast %57 : vector<8x32xf32> to vector<1x8x32xf32>
      tpu.vector_store %arg19[%c0_29, %c0_30, %c0_31], %60 {strides = array<i32>} : memref<1x8x32xf32, #tpu.memory_space<vmem>>, vector<1x8x32xf32>,
    } else {
    }
    return
  }
  func.func @transform_0(%arg0: i32, %arg1: i32, %arg2: i32) -> (i32, i32, i32) {
    %c0_i32 = arith.constant 0 : i32
    %c0_i32_0 = arith.constant 0 : i32
    return %arg0, %arg1, %c0_i32 : i32, i32, i32
  }
  func.func @transform_1(%arg0: i32, %arg1: i32, %arg2: i32) -> (i32, i32, i32) {
    %c0_i32 = arith.constant 0 : i32
    %c0_i32_0 = arith.constant 0 : i32
    return %arg0, %arg1, %c0_i32 : i32, i32, i32
  }
  func.func @transform_2(%arg0: i32, %arg1: i32, %arg2: i32) -> (i32, i32, i32, i32) {
    %c0_i32 = arith.constant 0 : i32
    %c0_i32_0 = arith.constant 0 : i32
    %c0_i32_1 = arith.constant 0 : i32
    %c0_i32_2 = arith.constant 0 : i32
    return %arg0, %c0_i32, %c0_i32_0, %c0_i32_1 : i32, i32, i32, i32
  }
  func.func @transform_3(%arg0: i32, %arg1: i32, %arg2: i32) -> (i32, i32, i32, i32) {
    %c0_i32 = arith.constant 0 : i32
    %c0_i32_0 = arith.constant 0 : i32
    %c0_i32_1 = arith.constant 0 : i32
    %c0_i32_2 = arith.constant 0 : i32
    return %arg0, %c0_i32, %c0_i32_0, %c0_i32_1 : i32, i32, i32, i32
  }
  func.func @transform_4(%arg0: i32, %arg1: i32, %arg2: i32) -> (i32, i32) {
    %c0_i32 = arith.constant 0 : i32
    %c0_i32_0 = arith.constant 0 : i32
    %c0_i32_1 = arith.constant 0 : i32
    return %c0_i32, %c0_i32_0 : i32, i32
  }
  func.func @transform_5(%arg0: i32, %arg1: i32, %arg2: i32) -> (i32, i32) {
    %c0_i32 = arith.constant 0 : i32
    %c0_i32_0 = arith.constant 0 : i32
    %c0_i32_1 = arith.constant 0 : i32
    return %c0_i32, %c0_i32_0 : i32, i32
  }
  func.func @transform_6(%arg0: i32, %arg1: i32, %arg2: i32) -> (i32, i32) {
    %c0_i32 = arith.constant 0 : i32
    %c0_i32_0 = arith.constant 0 : i32
    %c0_i32_1 = arith.constant 0 : i32
    return %c0_i32, %c0_i32_0 : i32, i32
  }
  func.func @transform_7(%arg0: i32, %arg1: i32, %arg2: i32) -> (i32, i32) {
    %c0_i32 = arith.constant 0 : i32
    %c0_i32_0 = arith.constant 0 : i32
    %c0_i32_1 = arith.constant 0 : i32
    return %c0_i32, %c0_i32_0 : i32, i32
  }
  func.func @transform_8(%arg0: i32, %arg1: i32, %arg2: i32) -> (i32, i32) {
    %c0_i32 = arith.constant 0 : i32
    %c0_i32_0 = arith.constant 0 : i32
    %c0_i32_1 = arith.constant 0 : i32
    return %c0_i32, %c0_i32_0 : i32, i32
  }
  func.func @transform_9(%arg0: i32, %arg1: i32, %arg2: i32) -> (i32, i32) {
    %c0_i32 = arith.constant 0 : i32
    %c0_i32_0 = arith.constant 0 : i32
    %c0_i32_1 = arith.constant 0 : i32
    return %c0_i32, %c0_i32_0 : i32, i32
  }
  func.func @transform_10(%arg0: i32, %arg1: i32, %arg2: i32) -> (i32, i32) {
    %c0_i32 = arith.constant 0 : i32
    %c0_i32_0 = arith.constant 0 : i32
    return %c0_i32, %arg2 : i32, i32
  }
  func.func @transform_11(%arg0: i32, %arg1: i32, %arg2: i32) -> (i32, i32) {
    %c0_i32 = arith.constant 0 : i32
    %c0_i32_0 = arith.constant 0 : i32
    return %c0_i32, %arg2 : i32, i32
  }
  func.func @transform_12(%arg0: i32, %arg1: i32, %arg2: i32) -> (i32, i32) {
    %c0_i32 = arith.constant 0 : i32
    %c0_i32_0 = arith.constant 0 : i32
    return %arg2, %c0_i32 : i32, i32
  }
  func.func @transform_13(%arg0: i32, %arg1: i32, %arg2: i32) -> (i32, i32) {
    %c0_i32 = arith.constant 0 : i32
    %c0_i32_0 = arith.constant 0 : i32
    %c0_i32_1 = arith.constant 0 : i32
    return %c0_i32, %c0_i32_0 : i32, i32
  }
  func.func @transform_14(%arg0: i32, %arg1: i32, %arg2: i32) -> (i32, i32) {
    %c0_i32 = arith.constant 0 : i32
    %c0_i32_0 = arith.constant 0 : i32
    %c0_i32_1 = arith.constant 0 : i32
    return %c0_i32, %c0_i32_0 : i32, i32
  }
  func.func @transform_15(%arg0: i32, %arg1: i32, %arg2: i32) -> (i32, i32) {
    %c0_i32 = arith.constant 0 : i32
    %c0_i32_0 = arith.constant 0 : i32
    %c0_i32_1 = arith.constant 0 : i32
    return %c0_i32, %c0_i32_0 : i32, i32
  }
  func.func @transform_16(%arg0: i32, %arg1: i32, %arg2: i32) -> (i32, i32, i32) {
    %c0_i32 = arith.constant 0 : i32
    %c0_i32_0 = arith.constant 0 : i32
    return %arg0, %arg1, %c0_i32 : i32, i32, i32
  }
}

</mosaic_0001>

<bundles_post_ra>
// kernel: tpu_custom_call.1
= control target key start
LH: loop header
LB: loop body
LE: loop exit
PB: predicated region body
PF: predicated region fallthrough
CT: control target
= control target key end

     0   :  { %s2739_s0 = inlined_call_operand.vmem [shape: f32[2,8,32], index: 0, kind: input, shape index: {}]   ;;  %s2740_s1 = inlined_call_operand.hbm [shape: bf16[2,8,8], index: 1, kind: input, shape index: {}]   ;;  %s2741_s2 = inlined_call_operand.vmem [shape: bf16[2,2,8,16], index: 2, kind: input, shape index: {}]   ;;  %s2742_s3 = inlined_call_operand.vmem [shape: bf16[2,2,8,16], index: 3, kind: input, shape index: {}]   ;;  %s2743_s4 = inlined_call_operand.vmem [shape: bf16[32,32], index: 4, kind: input, shape index: {}]   ;;  %s2744_s5 = inlined_call_operand.vmem [shape: f32[1,32], index: 5, kind: input, shape index: {}]   ;;  %s2745_s6 = inlined_call_operand.vmem [shape: bf16[32,32], index: 6, kind: input, shape index: {}]   ;;  %s2746_s7 = inlined_call_operand.vmem [shape: f32[1,32], index: 7, kind: input, shape index: {}]   ;;  %s2747_s8 = inlined_call_operand.hbm [shape: f32[1,32], index: 8, kind: input, shape index: {}]   ;;  %s2748_s9 = inlined_call_operand.hbm [shape: f32[1,32], index: 9, kind: input, shape index: {}]   ;;  %s2749_s10 = inlined_call_operand.vmem [shape: bf16[32,128], index: 10, kind: input, shape index: {}]   ;;  %s2750_s11 = inlined_call_operand.vmem [shape: f32[1,128], index: 11, kind: input, shape index: {}]   ;;  %s2751_s12 = inlined_call_operand.vmem [shape: bf16[128,32], index: 12, kind: input, shape index: {}]   ;;  %s2752_s13 = inlined_call_operand.vmem [shape: f32[1,32], index: 13, kind: input, shape index: {}]   ;;  %s2753_s14 = inlined_call_operand.vmem [shape: f32[1,32], index: 14, kind: input, shape index: {}]   ;;  %s2754_s15 = inlined_call_operand.vmem [shape: f32[1,32], index: 15, kind: input, shape index: {}]   ;;  %s2755_s16 = inlined_call_operand.hbm [shape: f32[2,8,32], index: 16, kind: output, shape index: {}]  }
   0x1   :  { %2764 = sst [smem:[#allocation16_spill]] %s2739_s0 }
   0x2   :  { %2765 = sst [smem:[#allocation17_spill]] %s2740_s1 }
   0x3   :  { %2766 = sst [smem:[#allocation18_spill]] %s2741_s2 }
   0x4   :  { %2767 = sst [smem:[#allocation19_spill]] %s2747_s8 }
   0x5   :  { %2768 = sst [smem:[#allocation20_spill]] %s2750_s11 }
   0x6   :  { %2769 = sst [smem:[#allocation21_spill]] %s2751_s12 }
   0x7   :  { %2770 = sst [smem:[#allocation22_spill]] %s2752_s13 }
   0x8   :  { %2771 = sst [smem:[#allocation23_spill]] %s2753_s14 }
   0x9   :  { %2772 = sst [smem:[#allocation24_spill]] %s2754_s15 }
   0xa   :  { %2773 = sst [smem:[#allocation25_spill]] %s2755_s16 }
   0xb   :  { %21 = vsyncpa [#allocation5], 0 }
   0xc   :  { %23 = vsyncpa [#allocation5 + $0x1], 0 }
   0xd   :  { %24 = vsyncpa [#allocation8], 0 }
   0xe   :  { %25 = vsyncpa [#allocation6], 0 }
   0xf   :  { %27 = vsyncpa [#allocation6 + $0x1], 0  ;;  %s2317_s21 = smov 0   ;;  %s2319_s22 = smov 0  }
  0x10   :  { %s2321_s23 = smov 0   ;;  %s2323_s24 = smov 0  }
  0x11   :  { %s2325_s25 = smov 0   ;;  %s2327_s26 = smov 0  }
  0x12 LB: > { %2774 = sst [smem:[#allocation14_spill]] %s2199_s21  ;;  %s1779_s27 = sadd.s32 4294967295, %s2219_s26   ;;  %s2219_s26 = sphi %s2327_s26, %s33_s26   ;;  %s2215_s25 = sphi %s2325_s25, %s2806_s25   ;;  %s2211_s24 = sphi %s2323_s24, %s2805_s24   ;;  %s2207_s23 = sphi %s2321_s23, %s2804_s23   ;;  %s2203_s22 = sphi %s2319_s22, %s2803_s22   ;;  %s2199_s21 = sphi %s2317_s21, %s2802_s21  }
  0x13   : > { %s1780_s28 = sadd.s32 4294967294, %s2219_s26   ;;  %p102_p0 = scmp.ne.s32.totalorder %s2203_s22, %s2199_s21 }
  0x14   : > { %p2351_p1 = scmp.eq.s32.totalorder %s1779_s27, 0  ;;  %p2355_p2 = scmp.eq.s32.totalorder %s1779_s27, 1 }
  0x15   : > { %p453_p3 = scmp.eq.s32.totalorder %s1780_s28, 1  ;;  %p1781_p5 = scmp.ge.s32.totalorder %s2219_s26, 1 }
  0x16   : > { %s2775_s29 = scalar_select %p2351_p1, 1, 0 }
  0x17   : > { %s2776_s30 = scalar_select %p2355_p2, 1, 0 }
  0x18   : > { %p2361_p4 = por %p2351_p1, %p102_p0  ;;  %p2366_p6 = por %p453_p3, %p102_p0 }
  0x19   : > { %p460_p7 = scmp.lt.s32.totalorder %s2219_s26, 3  ;;  %s2221_s19 = smov [#allocation7]  }
  0x1a   : > { %s2777_s0 = scalar_select %p2361_p4, 1, 0 }
  0x1b   : > { %s2778_s17 = scalar_select %p2366_p6, 1, 0 }
  0x1c   : > { %p2371_p8 = pnand %p1781_p5, %p460_p7  ;;  %s485_s20 = sshll.u32 %s2221_s19, 4  ;;  %s486_s20 = int_to_ptr.vmem [resolvable:$true] %s485_s20 }
  0x1d   : > { %2779 = sst [smem:[#allocation15_spill]] %s2778_s17  ;;  %s2222_s27 = smov [#allocation9]  }
  0x1e   : > { %s2780_s18 = scalar_select %p2371_p8, 1, 0 }
  0x1f   : > { %p1943_p10 = pneg %p2371_p8  ;;  %s496_s28 = sshll.u32 %s2222_s27, 4  ;;  %s2384_s28 = int_to_ptr.vmem [resolvable:$true] %s496_s28 }
  0x20   : > { %s2782_s8 = sld [smem:[#allocation19_spill]] }
  0x21   : > { %p2380_p11 = pnand %p1943_p10, %p2351_p1 }
  0x23   : > { %p2049_p13 = pneg %p2380_p11 }
  0x26   : > { %s2047_s15 = scalar_lea.hbm %s2782_s8, 16 }
  0x27   : > { %p2048_p12 = scmp.ne.s32.totalorder %s2782_s8, %s2047_s15  ;;  %p2054_p5 = scmp.lt.u32.totalorder %s2047_s15, %s2782_s8 }
  0x29   : > { %p2050_p0 = pnand %p2049_p13, %p2048_p12 }
  0x2b   : > { %p2051_p3 = pneg %p2050_p0 }
  0x2d   : > { %p2056_p7 = pnand %p2054_p5, %p2051_p3 }
  0x2f   : > { %2059 = shalt.err (!%p2056_p7)
}
  0x30   : > { %s2060_s11 = scalar_lea.vmem %s486_s20, 16  ;;  %s2067_s14 = scalar_lea.vmem %s486_s20, 32 }
  0x31   : > { %p2061_p10 = scmp.ne.s32.totalorder %s486_s20, %s2060_s11  ;;  %p2068_p1 = scmp.lt.s32.totalorder %s486_s20, %s486_s20 }
  0x32   : > { %p2069_p4 = scmp.lt.s32.totalorder %s2067_s14, %s2060_s11 }
  0x33   : > { %p2063_p9 = pnand %p2061_p10, %p2049_p13 }
  0x34   : > { %p2070_p8 = por %p2069_p4, %p2068_p1 }
  0x35   : > { %p2064_p6 = pneg %p2063_p9 }
  0x37   : > { %p2071_p2 = pnand %p2070_p8, %p2064_p6 }
  0x39   : > { %2074 = shalt.err (!%p2071_p2)
}
  0x3a   : > { %1946 = dma.hbm_to_vmem [thread:$0]  (!%p2380_p11), %s2782_s8, 16, %s486_s20, [#allocation8]  }
  0x3b   : > { %s2075_s19 = scalar_lea.hbm %s2748_s9, 16 }
  0x3c   : > { %p2076_p9 = scmp.ne.s32.totalorder %s2748_s9, %s2075_s19  ;;  %p2082_p2 = scmp.lt.u32.totalorder %s2075_s19, %s2748_s9 }
  0x3e   : > { %p2078_p1 = pnand %p2076_p9, %p2049_p13 }
  0x40   : > { %p2079_p4 = pneg %p2078_p1 }
  0x42   : > { %p2084_p6 = pnand %p2082_p2, %p2079_p4 }
  0x44   : > { %2087 = shalt.err (!%p2084_p6)
}
  0x45   : > { %s2088_s20 = scalar_lea.vmem %s2384_s28, 16  ;;  %s2095_s12 = scalar_lea.vmem %s2384_s28, 32 }
  0x46   : > { %p2089_p8 = scmp.ne.s32.totalorder %s2384_s28, %s2088_s20  ;;  %p2096_p3 = scmp.lt.s32.totalorder %s2384_s28, %s2384_s28 }
  0x47   : > { %p2097_p5 = scmp.lt.s32.totalorder %s2095_s12, %s2088_s20 }
  0x48   : > { %p2091_p12 = pnand %p2089_p8, %p2049_p13 }
  0x49   : > { %p2098_p7 = por %p2097_p5, %p2096_p3 }
  0x4a   : > { %p2092_p0 = pneg %p2091_p12 }
  0x4c   : > { %p2099_p10 = pnand %p2098_p7, %p2092_p0 }
  0x4e   : > { %2102 = shalt.err (!%p2099_p10)
}
  0x4f   : > { %1949 = dma.hbm_to_vmem [thread:$0]  (!%p2380_p11), %s2748_s9, 16, %s2384_s28, [#allocation8]  }
  0x50   : > { %s52_s15 = sadd.s32 1, %s2215_s25  ;;  %s89_s17 = sadd.s32 1, %s2207_s23 }
  0x51   : > { %p54_p13 = scmp.ge.s32.totalorder %s52_s15, 2  ;;  %p96_p9 = scmp.ne.s32.totalorder %s2207_s23, %s2203_s22 }
  0x52   : > { %p97_p1 = scmp.eq.s32.totalorder %s2219_s26, 0  ;;  %p1960_p4 = scmp.lt.s32.totalorder %s2219_s26, 2 }
  0x53   : > { %s2808_s15 = smov (%p54_p13, %s52_s15), 0  ;;  %p2783_p6 = scmp.ne.s32.totalorder %s2776_s30, 0 }
  0x54   : > { %p98_p2 = por %p97_p1, %p96_p9  ;;  %s84_s19 = ssub.s32 %s2215_s25, %s2808_s15 }
  0x55   : > { %p2444_p8 = por %p2783_p6, %p96_p9  ;;  %s548_s27 = sand.u32 1, %s2207_s23  }
  0x56   : > { %p87_p12 = scmp.eq.s32.totalorder %s84_s19, 0  ;;  %s1788_s28 = sshll.u32 %s548_s27, 2 }
  0x57   : > { %s1789_s11 = sshll.u32 %s2215_s25, 6  ;;  %s2785_s1 = sld [smem:[#allocation17_spill]] }
  0x58   : > { %s2453_s14 = scalar_select %p87_p12, %s2207_s23, %s89_s17  }
  0x59   : > { %s552_s30 = scalar_lea.vmem [#allocation4], %s1788_s28  ;;  %p2462_p11 = pnand %p1960_p4, %p98_p2 }
  0x5a   : > { %s560_s13 = sshll.u32 %s552_s30, 4  ;;  %s549_s17 = scalar_lea.sflag [#allocation5], %s548_s27  ;;  %s2466_s13 = int_to_ptr.vmem [resolvable:$true] %s560_s13 }
  0x5b   : > { %p2105_p3 = pneg %p2462_p11 }
  0x5d   : > { %s2458_s16 = scalar_lea.hbm %s2785_s1, %s1789_s11  ;;  %s2108_s20 = scalar_lea.hbm %s2785_s1, 128 }
  0x5e   : > { %s2103_s19 = scalar_lea.hbm %s2458_s16, 64  ;;  %p2109_p10 = scmp.lt.u32.totalorder %s2458_s16, %s2785_s1 }
  0x5f   : > { %p2104_p0 = scmp.ne.s32.totalorder %s2458_s16, %s2103_s19  ;;  %p2110_p13 = scmp.lt.u32.totalorder %s2108_s20, %s2103_s19 }
  0x60   : > { %p2112_p1 = scmp.lt.u32.totalorder %s2103_s19, %s2458_s16 }
  0x61   : > { %p2106_p5 = pnand %p2105_p3, %p2104_p0  ;;  %p2111_p9 = por %p2110_p13, %p2109_p10 }
  0x63   : > { %p2107_p7 = pneg %p2106_p5  ;;  %p2113_p4 = por %p2112_p1, %p2111_p9 }
  0x65   : > { %p2114_p2 = pnand %p2113_p4, %p2107_p7 }
  0x67   : > { %2117 = shalt.err (!%p2114_p2)
}
  0x68   : > { %s2118_s27 = scalar_lea.vmem %s2466_s13, 64  ;;  %s2223_s28 = smov [#allocation4]  }
  0x69   : > { %p2119_p6 = scmp.ne.s32.totalorder %s2466_s13, %s2118_s27  ;;  %s2123_s11 = sshll.u32 %s2223_s28, 4  ;;  %s2124_s11 = int_to_ptr.vmem [resolvable:$false] %s2123_s11 }
  0x6a   : > { %s2125_s12 = scalar_lea.vmem %s2124_s11, 128  ;;  %p2126_p5 = scmp.lt.s32.totalorder %s2466_s13, %s2124_s11 }
  0x6b   : > { %p2121_p12 = pnand %p2119_p6, %p2105_p3  ;;  %p2127_p10 = scmp.lt.s32.totalorder %s2125_s12, %s2118_s27 }
  0x6d   : > { %p2122_p0 = pneg %p2121_p12  ;;  %p2128_p13 = por %p2127_p10, %p2126_p5 }
  0x6f   : > { %p2129_p9 = pnand %p2128_p13, %p2122_p0 }
  0x71   : > { %2132 = shalt.err (!%p2129_p9)
}
  0x72   : > { %1953 = dma.hbm_to_vmem [thread:$0]  (!%p2462_p11), %s2458_s16, 64, %s2466_s13, %s549_s17  }
  0x73   : > { %p2787_p7 = scmp.ne.s32.totalorder %s2780_s18, 0 }
  0x74   : > { %s2496_s19 = sand.u32 (!%p2787_p7), 1, %s2203_s22   ;;  %p2788_p3 = scmp.ne.s32.totalorder (!%p2787_p7), %s2777_s0, 0 }
  0x75   : > { %585 = sbr.rel (%p2787_p7) target bundleno = 2690 (0xa82), region = 84  ;;  %s1791_s20 = sshll.u32 (!%p2787_p7), %s2496_s19, 2 }
  0x76   : > { %s588_s30 = scalar_lea.sflag (!%p2787_p7), [#allocation5], %s2496_s19  ;;  %s2500_s27 = scalar_lea.vmem (!%p2787_p7), [#allocation4], %s1791_s20 }
  0x7c   : > { %2186 = dma.done.wait (%p2788_p3), %s588_s30, 64  }
  0x7d   : > { %2188 = vsyncadd (%p2788_p3), %s588_s30, 4294967232  ;;  %p2789_p11 = scmp.ne.s32.totalorder %s2775_s29, 0 }
  0x7f   : > { %2190 = dma.done.wait (%p2789_p11), [#allocation8], 32  }
  0x80   : > { %2192 = vsyncadd (%p2789_p11), [#allocation8], 4294967264  ;;  %p677_p1 = scmp.lt.s32.totalorder %s2211_s24, 1  ;;  %vm737_vm0 = vcmask 261120   ;;  %v2224_v0 = vmov 0.0   ;;  %vm2225_vm1 = vmmov 0   ;;  %v789_v17 = vlaneseq }
  0x81   : > { %1863 = vmatprep.subr.bf16.mxu0 %v2224_v0  ;;  %1867 = vmatprep.mubr.msk.bf16.mxu0 %vm2225_vm1, %v2224_v0  ;;  %1358 = vst.msk [vmem:[#allocation3] sm:$0xff] %vm737_vm0, %v2224_v0  ;;  %s2790_s16 = sld [smem:[#allocation16_spill]]  ;;  %v2021_v1 = vld [vmem:[%s2743_s4] sm:$0xff]   ;;  %v2022_v2 = vld [vmem:[%s2743_s4 + $0x8] sm:$0xff]   ;;  %s2791_s2 = sld [smem:[#allocation18_spill]]  ;;  %vm925_vm2 = vcmask 130048  }
  0x82   : > { %s678_s8 = scalar_select %p677_p1, %s2211_s24, 1  ;;  %1883 = vmatprep.subr.bf16.mxu1 %v2224_v0  ;;  %1885 = vmatprep.mubr.msk.bf16.mxu1 %vm2225_vm1, %v2224_v0  ;;  %v1800_v5 = vld [vmem:[%s2744_s5] ss:$0 sm:$0xff]  ;;  %v2227_v15 = vmov 1983009808   ;;  %v790_v19 = vshrl.u32 %v789_v17, 7 }
  0x83   : > { %1864 = vmatpush3.bf16.msra.mxu0 %v2021_v1  ;;  %v787_v16 = vunpack.c.l.s4 %v2227_v15  ;;  %v2228_v20 = vmov 1934713408   ;;  %v2229_v26 = vmov 0   ;;  %vm1018_vm3 = vcmask 64512   ;;  %s2230_s20 = smov 16   ;;  %s2793_s30 = sld [smem:[#allocation20_spill]] }
  0x84   : > { %s2520_s29 = sshll.u32 %s678_s8, 3  ;;  %1865 = vmatprep.subr.bf16.mxu0 %v2224_v0  ;;  %s2226_s8 = smov 112   ;;  %v795_v21 = vunpack.c.l.s4 %v2228_v20  ;;  %vm1048_vm4 = vcmask 1043456  }
  0x85   : > { %v788_v18 = vunpack.c.0.s8 %v787_v16  ;;  %s693_s17 = scalar_lea.vmem %s2742_s3, %s2520_s29  ;;  %s2794_s18 = sld [smem:[#allocation22_spill]] }
  0x86   : > { %v796_v23 = vunpack.c.0.s8 %v795_v21  ;;  %s2796_s12 = sld [smem:[#allocation24_spill]]  ;;  %s2797_s1 = sld [smem:[#allocation25_spill]] }
  0x87   : > { %s683_s13 = scalar_lea.vmem %s2790_s16, %s2520_s29  ;;  %1866 = vmatpush3.bf16.msra.mxu0 %v2022_v2  ;;  %s2548_s16 = scalar_lea.vmem %s2791_s2, %s2520_s29  ;;  %v2553_v22 = vsub.s32 %v788_v18, %v790_v19 }
  0x88   : > { %v2532_v3 = vld [vmem:[%s683_s13] sm:$0xff]  ;;  %1871 = vmatprep.subr.bf16.mxu0 %v2224_v0  ;;  %v2556_v25 = vsub.s32 %v796_v23, %v790_v19  ;;  %s2792_s29 = sld [smem:[#allocation21_spill]] }
  0x89   : > { %v713_v4 = vpack.c.bf16 %v2532_v3, %v2532_v3  ;;  %v921_v13 = vld [vmem:[%s2548_s16] sm:$0xf]  ;;  %v922_v2 = vld [vmem:[%s2548_s16 + $0x4] sm:$0xf]  ;;  %s1794_s16 = sshll.u32 %s2496_s19, 3 }
  0x8a   : > { %v930_v14 = vsel %vm925_vm2, %v921_v13, 0 }
  0x8b   : > { %1868 = vmatmul.mubr.msk.bf16.vlgmr.msra.gmra.mrb[0].mxu0 %vm737_vm0, %v713_v4 }
  0x8c   : > { %1873 = vmatprep.mubr.msk.bf16.mxu0 %vm2225_vm1, %v2224_v0 }
  0x90   : > { %1872 = vmatpush3.bf16.xpose.msra.mxu0 %v930_v14 }
  0x91   : > { %1877 = vmatprep.subr.bf16.mxu0 %v2224_v0 }
 0x15e   : > { %v775_v6 = vpop.f32.mrb[0].mxu0 }
 0x15f   : > { %v776_v7 = vadd.f32 %v1800_v5, %v775_v6  ;;  %v1869_v8 = vpop.f32.mrb[1].mxu0 }
 0x160   : > { %v778_v9 = vpop.f32.mrb[2].mxu0 }
 0x161   : > { %v781_v10 = vmul.f32 0.25, %v776_v7  ;;  %v1870_v11 = vpop.f32.mrb[3].mxu0  ;;  %v976_v7 = vsel %vm925_vm2, %v922_v2, 0 }
 0x162   : > { %v923_v11 = vld [vmem:[%s2500_s27] sm:$0xf]  ;;  %s1582_s27 = scalar_lea.sflag [#allocation6], %s2496_s19 }
 0x163   : > { %v782_v12 = vpack.c.bf16 %v781_v10, %v781_v10 }
 0x165   : > { %784 = vrot.lane.b32.xlu0 %v782_v12, %s2226_s8  ;;  %v792_v24 = vrot.slane %v782_v12, %v2553_v22  ;;  %v924_v12 = vunpack.c.l.bf16 %v923_v11 }
 0x167   : > { %v793_v27 = vcombine.high %v792_v24, %v2229_v26  ;;  %v800_v28 = vrot.slane %v792_v24, %v2556_v25 }
 0x169   : > { %v807_v30 = vrot.slane %v793_v27, %v2556_v25  ;;  %v808_v32 = vcombine.high %v800_v28, %v2229_v26  ;;  %v839_v39 = vshrl.u32 %v800_v28, 16 }
 0x16b   : > { %v809_v35 = vcombine.high %v807_v30, %v2229_v26  ;;  %v847_v40 = vshrl.u32 %v808_v32, 16  ;;  %v855_v43 = vshrl.u32 %v807_v30, 16 }
 0x16d   : > { %v863_v47 = vshrl.u32 %v809_v35, 16 }
 0x1d7   : > { %v785_v29 = vpop.permute.xlu0 %784 }
 0x1d8   : > { %v817_v31 = vrot.slane %v785_v29, %v2553_v22 }
 0x1da   : > { %v818_v33 = vcombine.high %v817_v31, %v2229_v26  ;;  %v825_v34 = vrot.slane %v817_v31, %v2556_v25 }
 0x1dc   : > { %v832_v36 = vrot.slane %v818_v33, %v2556_v25  ;;  %v833_v37 = vcombine.high %v825_v34, %v2229_v26  ;;  %v840_v38 = vshrl.u32 %v825_v34, 16  ;;  %v837_v44 = vpack.i.b16 %v825_v34, %v800_v28 }
 0x1de   : > { %v834_v41 = vcombine.high %v832_v36, %v2229_v26  ;;  %v848_v42 = vshrl.u32 %v833_v37, 16  ;;  %v853_v45 = vpack.i.b16 %v832_v36, %v807_v30  ;;  %v856_v46 = vshrl.u32 %v832_v36, 16 }
 0x1df   : > { %v845_v48 = vpack.i.b16 %v833_v37, %v808_v32  ;;  %v841_v51 = vpack.i.b16 %v840_v38, %v839_v39  ;;  %v1043_v37 = vld [vmem:[%s693_s17] sm:$0xf]  ;;  %v1044_v39 = vld [vmem:[%s693_s17 + $0x4] sm:$0xf]  ;;  %s2795_s17 = sld [smem:[#allocation23_spill]] }
 0x1e0   : > { %v861_v49 = vpack.i.b16 %v834_v41, %v809_v35  ;;  %v864_v50 = vshrl.u32 %v834_v41, 16  ;;  %v857_v52 = vpack.i.b16 %v856_v46, %v855_v43  ;;  %v867_v53 = vcombine.low %v837_v44, %v853_v45 }
 0x1e1   : > { %v849_v54 = vpack.i.b16 %v848_v42, %v847_v40  ;;  %v1050_v38 = vsel %vm1048_vm4, %v1043_v37, 0  ;;  %v1096_v40 = vsel %vm1048_vm4, %v1044_v39, 0 }
 0x1e2   : > { %v865_v55 = vpack.i.b16 %v864_v50, %v863_v47  ;;  %v875_v56 = vcombine.low %v845_v48, %v861_v49  ;;  %v891_v57 = vcombine.low %v841_v51, %v857_v52  ;;  %v874_v58 = vrot.slane %v867_v53, %v2553_v22  ;;  %1884 = vmatpush3.bf16.msra.mxu1 %v1050_v38  ;;  %v2023_v49 = vld [vmem:[%s2745_s6] sm:$0xff]   ;;  %v2024_v50 = vld [vmem:[%s2745_s6 + $0x8] sm:$0xff]  }
 0x1e3   : > { %1895 = vmatprep.subr.bf16.mxu1 %v2224_v0 }
 0x1e4   : > { %v882_v59 = vrot.slane %v875_v56, %v2553_v22  ;;  %v899_v60 = vcombine.low %v849_v54, %v865_v55  ;;  %v898_v62 = vrot.slane %v891_v57, %v2553_v22 }
 0x1e6   : > { %v883_v61 = vcombine.low %v874_v58, %v882_v59  ;;  %v906_v63 = vrot.slane %v899_v60, %v2553_v22 }
 0x1e8   : > { %v907_v1 = vcombine.low %v898_v62, %v906_v63  ;;  %v890_v4 = vrot.slane %v883_v61, %v2556_v25 }
 0x1ea   : > { %v914_v5 = vrot.slane %v907_v1, %v2556_v25  ;;  %v918_v9 = vshrl.u32 %v890_v4, 16 }
 0x1ec   : > { %v917_v6 = vpack.i.b16 %v914_v5, %v890_v4  ;;  %v919_v8 = vshrl.u32 %v914_v5, 16 }
 0x1ee   : > { %1874 = vmatmul.mubr.msk.bf16.vlgmr.msra.gmra.mrb[4].mxu0 %vm925_vm2, %v917_v6  ;;  %v920_v10 = vpack.i.b16 %v919_v8, %v918_v9 }
 0x1ef   : > { %1878 = vmatpush3.bf16.xpose.msra.mxu0 %v976_v7  ;;  %1879 = vmatprep.mubr.msk.bf16.mxu0 %vm2225_vm1, %v2224_v0 }
 0x1f0   : > { %1889 = vmatprep.subr.bf16.mxu0 %v2224_v0 }
 0x1f6   : > { %1880 = vmatmul.mubr.msk.bf16.vlgmr.msra.gmra.mrb[8].mxu0 %vm925_vm2, %v920_v10 }
 0x1f7   : > { %1891 = vmatprep.mubr.msk.bf16.mxu0 %vm2225_vm1, %v2224_v0  ;;  %1890 = vmatpush3.bf16.msra.mxu0 %v1096_v40 }
 0x1f8   : > { %1903 = vmatprep.subr.bf16.mxu0 %v2224_v0 }
 0x2c1   : > { %v966_v13 = vpop.f32.mrb[4].mxu0 }
 0x2c2   : > { %v967_v14 = vadd.f32 %v966_v13, %v924_v12  ;;  %v1875_v15 = vpop.f32.mrb[5].mxu0 }
 0x2c3   : > { %v969_v16 = vpop.f32.mrb[6].mxu0 }
 0x2c4   : > { %v1876_v17 = vpop.f32.mrb[7].mxu0  ;;  %v1019_v18 = vsel %vm1018_vm3, %v967_v14, -inf }
 0x2c5   : > { %1020 = vmax.xlane.f32.xlu0 %v1019_v18 }
 0x2c9   : > { %v1012_v19 = vpop.f32.mrb[8].mxu0 }
 0x2ca   : > { %v1013_v20 = vadd.f32 %v1012_v19, %v924_v12  ;;  %v1881_v21 = vpop.f32.mrb[9].mxu0 }
 0x2cb   : > { %v1015_v23 = vpop.f32.mrb[10].mxu0 }
 0x2cc   : > { %v1882_v24 = vpop.f32.mrb[11].mxu0  ;;  %v1022_v26 = vsel %vm1018_vm3, %v1013_v20, -inf }
 0x2cd   : > { %1023 = vmax.xlane.f32.xlu1 %v1022_v26 }
 0x352   : > { %v1021_v27 = vpop.xlane.xlu0 %1020 }
 0x353   : > { %v1025_v28 = vsub.f32 %v967_v14, %v1021_v27 }
 0x355   : > { %v1027_v29 = vmul.f32 1.442695, %v1025_v28 }
 0x357   : > { %2035 = vpow2.f32 %v1027_v29 }
 0x35a   : > { %v1024_v30 = vpop.xlane.xlu1 %1023 }
 0x35b   : > { %v1026_v31 = vsub.f32 %v1013_v20, %v1024_v30 }
 0x35d   : > { %v1029_v32 = vmul.f32 1.442695, %v1026_v31 }
 0x35f   : > { %2037 = vpow2.f32 %v1029_v32 }
 0x361   : > { %v2036_v33 = vpop.eup %2035 }
 0x362   : > { %v1031_v34 = vsel %vm1018_vm3, %v2036_v33, 0.0 }
 0x363   : > { %1032 = vadd.xlane.f32.xlu1 %v1031_v34 }
 0x369   : > { %v2038_v35 = vpop.eup %2037 }
 0x36a   : > { %v1034_v36 = vsel %vm1018_vm3, %v2038_v35, 0.0 }
 0x36b   : > { %1035 = vadd.xlane.f32.xlu1 %v1034_v36 }
 0x3f0   : > { %v1033_v41 = vpop.xlane.xlu1 %1032 }
 0x3f1   : > { %2039 = vrcp.f32 %v1033_v41  ;;  %v2025_v41 = vld [vmem:[%s2749_s10] sm:$0xff]  }
 0x3f8   : > { %v1036_v42 = vpop.xlane.xlu1 %1035 }
 0x3f9   : > { %2041 = vrcp.f32 %v1036_v42  ;;  %v2026_v42 = vld [vmem:[%s2749_s10 + $0x8] sm:$0xff]  }
 0x3fb   : > { %v2040_v43 = vpop.eup %2039 }
 0x3fc   : > { %v1039_v44 = vmul.f32 %v2040_v43, %v2036_v33  ;;  %v2028_v43 = vld [vmem:[%s2792_s29 + $0x8] sm:$0xff]  }
 0x3fe   : > { %v1041_v45 = vpack.c.bf16 %v1039_v44, %v1039_v44  ;;  %v2029_v44 = vld [vmem:[%s2792_s29 + $0x10] sm:$0xff]  }
 0x400   : > { %1886 = vmatmul.mubr.msk.bf16.vlgmr.msra.gmra.mrb[0].mxu1 %vm1018_vm3, %v1041_v45  ;;  %v2030_v45 = vld [vmem:[%s2792_s29 + $0x18] sm:$0xff]  }
 0x401   : > { %1899 = vmatprep.mubr.msk.bf16.mxu1 %vm2225_vm1, %v2224_v0  ;;  %1896 = vmatpush3.bf16.msra.mxu1 %v2023_v49 }
 0x402   : > { %1897 = vmatprep.subr.bf16.mxu1 %v2224_v0 }
 0x403   : > { %v2042_v46 = vpop.eup %2041 }
 0x404   : > { %v1040_v47 = vmul.f32 %v2042_v46, %v2038_v35  ;;  %v2031_v46 = vld [vmem:[%s2792_s29 + $0x20] sm:$0xff]  }
 0x405   : > { %1898 = vmatpush3.bf16.msra.mxu1 %v2024_v50 }
 0x406   : > { %v1042_v48 = vpack.c.bf16 %v1040_v47, %v1040_v47  ;;  %1911 = vmatprep.subr.bf16.mxu1 %v2224_v0  ;;  %v2032_v47 = vld [vmem:[%s2792_s29 + $0x28] sm:$0xff]  }
 0x408   : > { %1892 = vmatmul.mubr.msk.bf16.vlgmr.msra.gmra.mrb[12].mxu0 %vm1018_vm3, %v1042_v48 }
 0x409   : > { %1907 = vmatprep.mubr.msk.bf16.mxu0 %vm2225_vm1, %v2224_v0  ;;  %1904 = vmatpush3.bf16.msra.mxu0 %v2025_v41 }
 0x40a   : > { %1905 = vmatprep.subr.bf16.mxu0 %v2224_v0 }
 0x40d   : > { %1906 = vmatpush3.bf16.msra.mxu0 %v2026_v42 }
 0x4d3   : > { %v1086_v51 = vpop.f32.mrb[0].mxu1 }
 0x4d4   : > { %v1887_v52 = vpop.f32.mrb[1].mxu1  ;;  %v1138_v55 = vcombine.high %v1086_v51, %v2224_v0  ;;  %v1145_v57 = vrot.slane %v1086_v51, %v2553_v22 }
 0x4d5   : > { %v1089_v53 = vpop.f32.mrb[2].mxu1  ;;  %v1814_v52 = vld [vmem:[#allocation7] ss:$0 sm:$0xff] }
 0x4d6   : > { %v1888_v54 = vpop.f32.mrb[3].mxu1  ;;  %v1152_v62 = vrot.slane %v1138_v55, %v2553_v22 }
 0x4d7   : > { %v1815_v54 = vld [vmem:[#allocation9] ss:$0 sm:$0xff] }
 0x4db   : > { %v1132_v56 = vpop.f32.mrb[12].mxu0 }
 0x4dc   : > { %v1153_v58 = vcombine.high %v1132_v56, %v2224_v0  ;;  %v1160_v59 = vrot.slane %v1132_v56, %v2553_v22  ;;  %v1893_v60 = vpop.f32.mrb[13].mxu0 }
 0x4dd   : > { %v1135_v61 = vpop.f32.mrb[14].mxu0  ;;  %v2034_v60 = vld [vmem:[%s2792_s29 + $0x38] sm:$0xff]  }
 0x4de   : > { %v1167_v63 = vrot.slane %v1153_v58, %v2553_v22  ;;  %v1168_v1 = vcombine.low %v1145_v57, %v1160_v59  ;;  %v1169_v2 = vcombine.high %v1145_v57, %v1160_v59  ;;  %v1894_v4 = vpop.f32.mrb[15].mxu0  ;;  %v2033_v59 = vld [vmem:[%s2792_s29 + $0x30] sm:$0xff]   ;;  %v1816_v61 = vld [vmem:[%s2793_s30] ss:$0 sm:$0xff]  ;;  %s676_s30 = scalar_lea.vmem [#allocation10], %s1794_s16 }
 0x4df   : > { %s1596_s8 = sshll.u32 %s676_s30, 4  ;;  %s2691_s8 = int_to_ptr.vmem [resolvable:$true] %s1596_s8 }
 0x4e0   : > { %v1176_v5 = vrot.slane %v1168_v1, %v2556_v25  ;;  %v1183_v6 = vrot.slane %v1169_v2, %v2556_v25  ;;  %v1184_v7 = vcombine.low %v1152_v62, %v1167_v63  ;;  %v1185_v8 = vcombine.high %v1152_v62, %v1167_v63  ;;  %s2133_s13 = scalar_lea.vmem %s2691_s8, 128 }
 0x4e1   : > { %p2134_p4 = scmp.ne.s32.totalorder %s2691_s8, %s2133_s13 }
 0x4e2   : > { %v1192_v9 = vrot.slane %v1184_v7, %v2556_v25  ;;  %v1199_v10 = vrot.slane %v1185_v8, %v2556_v25  ;;  %v1204_v11 = vcombine.low %v1176_v5, %v1183_v6  ;;  %v1808_v12 = vcombine.high %v1176_v5, %v1183_v6  ;;  %v1429_v7 = vld [vmem:[#allocation3] sm:$0xff] }
 0x4e3   : > { %p2135_p2 = pnand %p2134_p4, %p2444_p8 }
 0x4e4   : > { %v1211_v13 = vrot.slane %v1204_v11, %v2553_v22  ;;  %v1219_v14 = vrot.slane %v1808_v12, %v2553_v22  ;;  %v1220_v15 = vcombine.low %v1192_v9, %v1199_v10  ;;  %v1809_v16 = vcombine.high %v1192_v9, %v1199_v10 }
 0x4e5   : > { %p2136_p6 = pneg %p2135_p2 }
 0x4e6   : > { %v1227_v17 = vrot.slane %v1220_v15, %v2553_v22  ;;  %v1235_v18 = vrot.slane %v1809_v16, %v2553_v22  ;;  %v1236_v19 = vcombine.low %v1211_v13, %v1219_v14  ;;  %v1810_v22 = vld [vmem:[%s2746_s7] ss:$0 sm:$0xff] }
 0x4e7   : > { %v1828_v13 = vld [vmem:[%s2794_s18] ss:$0 sm:$0xff] }
 0x4e8   : > { %v1244_v20 = vcombine.low %v1227_v17, %v1235_v18  ;;  %v1243_v21 = vrot.slane %v1236_v19, %v2556_v25 }
 0x4ea   : > { %v1251_v23 = vrot.slane %v1244_v20, %v2556_v25 }
 0x4ec   : > { %v1253_v24 = vcombine.high %v1243_v21, %v1251_v23  ;;  %v1252_v26 = vcombine.low %v1243_v21, %v1251_v23 }
 0x4ee   : > { %1255 = vrot.lane.b32.xlu1 %v1253_v24, %s2230_s20  ;;  %s1832_s20 = sshll.u32 %s2211_s24, 7  ;;  %s2231_s24 = smov [#allocation10]  }
 0x4ef   : > { %s2689_s2 = scalar_lea.hbm %s2797_s1, %s1832_s20  ;;  %s2137_s16 = sshll.u32 %s2231_s24, 4  ;;  %s2138_s16 = int_to_ptr.vmem [resolvable:$false] %s2137_s16 }
 0x4f0   : > { %p2140_p12 = scmp.lt.s32.totalorder %s2691_s8, %s2138_s16 }
 0x560   : > { %v1256_v27 = vpop.permute.xlu1 %1255 }
 0x561   : > { %v1258_v28 = vsel %vm925_vm2, %v1252_v26, %v1256_v27 }
 0x562   : > { %v1259_v29 = vpack.c.bf16 %v1258_v28, %v1258_v28  ;;  %v1829_v28 = vld [vmem:[%s2795_s17] ss:$0 sm:$0xff]  ;;  %s2139_s17 = scalar_lea.vmem %s2138_s16, 256 }
 0x563   : > { %p2141_p0 = scmp.lt.s32.totalorder %s2139_s17, %s2133_s13 }
 0x564   : > { %1900 = vmatmul.mubr.msk.bf16.vlgmr.msra.gmra.mrb[4].mxu1 %vm737_vm0, %v1259_v29 }
 0x565   : > { %1927 = vmatprep.mubr.msk.bf16.mxu1 %vm2225_vm1, %v2224_v0  ;;  %p2142_p5 = por %p2141_p0, %p2140_p12 }
 0x567   : > { %p2143_p10 = pnand %p2142_p5, %p2136_p6 }
 0x637   : > { %v1320_v30 = vpop.f32.mrb[4].mxu1 }
 0x638   : > { %v1321_v31 = vadd.f32 %v1810_v22, %v1320_v30  ;;  %v1901_v25 = vpop.f32.mrb[5].mxu1  ;;  %v1830_v22 = vld [vmem:[%s2796_s12] ss:$0 sm:$0xff] }
 0x639   : > { %v1323_v32 = vpop.f32.mrb[6].mxu1 }
 0x63a   : > { %v1902_v33 = vpop.f32.mrb[7].mxu1  ;;  %v1326_v34 = vadd.f32 %v1321_v31, %v2532_v3  ;;  %v2027_v3 = vld [vmem:[%s2792_s29] sm:$0xff]  }
 0x63b   : > { %1912 = vmatpush3.bf16.msra.mxu1 %v2027_v3 }
 0x63c   : > { %v1329_v35 = vsel %vm737_vm0, %v1326_v34, 0.0  ;;  %1913 = vmatprep.subr.bf16.mxu1 %v2224_v0 }
 0x63d   : > { %1330 = vadd.xlane.f32.xlu1 %v1329_v35 }
 0x63f   : > { %1914 = vmatpush3.bf16.msra.mxu1 %v2028_v43 }
 0x640   : > { %1915 = vmatprep.subr.bf16.mxu1 %v2224_v0 }
 0x643   : > { %1916 = vmatpush3.bf16.msra.mxu1 %v2029_v44 }
 0x644   : > { %1917 = vmatprep.subr.bf16.mxu1 %v2224_v0 }
 0x647   : > { %1918 = vmatpush3.bf16.msra.mxu1 %v2030_v45 }
 0x648   : > { %1919 = vmatprep.subr.bf16.mxu1 %v2224_v0 }
 0x64b   : > { %1920 = vmatpush3.bf16.msra.mxu1 %v2031_v46 }
 0x64c   : > { %1921 = vmatprep.subr.bf16.mxu1 %v2224_v0 }
 0x64f   : > { %1922 = vmatpush3.bf16.msra.mxu1 %v2032_v47 }
 0x650   : > { %1923 = vmatprep.subr.bf16.mxu1 %v2224_v0 }
 0x653   : > { %1924 = vmatpush3.bf16.msra.mxu1 %v2033_v59 }
 0x654   : > { %1925 = vmatprep.subr.bf16.mxu1 %v2224_v0 }
 0x657   : > { %1926 = vmatpush3.bf16.msra.mxu1 %v2034_v60 }
 0x6ca   : > { %v1331_v36 = vpop.xlane.xlu1 %1330 }
 0x6cb   : > { %v1333_v37 = vmul.f32 0.03125, %v1331_v36 }
 0x6cd   : > { %v1334_v38 = vsub.f32 %v1326_v34, %v1333_v37 }
 0x6cf   : > { %v1335_v39 = vmul.f32 %v1334_v38, %v1334_v38 }
 0x6d1   : > { %v1336_v40 = vsel %vm737_vm0, %v1335_v39, 0.0 }
 0x6d2   : > { %1337 = vadd.xlane.f32.xlu0 %v1336_v40 }
 0x75f   : > { %v1338_v48 = vpop.xlane.xlu0 %1337 }
 0x760   : > { %v1339_v49 = vmul.f32 0.03125, %v1338_v48 }
 0x762   : > { %v1340_v50 = vadd.f32 1e-05, %v1339_v49 }
 0x764   : > { %2043 = vrsqrt.f32 %v1340_v50 }
 0x76e   : > { %v2044_v51 = vpop.eup %2043 }
 0x76f   : > { %v1342_v53 = vmul.f32 %v2044_v51, %v1334_v38 }
 0x771   : > { %v1349_v55 = vmul.f32 %v1814_v52, %v1342_v53 }
 0x773   : > { %v1356_v56 = vadd.f32 %v1815_v54, %v1349_v55 }
 0x775   : > { %1357 = vst.msk [vmem:[#allocation2] sm:$0xff] %vm737_vm0, %v1356_v56 }
 0x77c   : > { %v1359_v57 = vld [vmem:[#allocation2] sm:$0xff] }
 0x77d   : > { %v1360_v58 = vpack.c.bf16 %v1359_v57, %v1359_v57 }
 0x77f   : > { %1908 = vmatmul.mubr.msk.bf16.vlgmr.msra.gmra.mrb[16].mxu0 %vm737_vm0, %v1360_v58 }
 0x852   : > { %v1422_v62 = vpop.f32.mrb[16].mxu0 }
 0x853   : > { %v1423_v63 = vadd.f32 %v1816_v61, %v1422_v62  ;;  %v1909_v1 = vpop.f32.mrb[17].mxu0 }
 0x854   : > { %v1425_v2 = vpop.f32.mrb[18].mxu0 }
 0x855   : > { %v1428_v4 = vmax.f32 %v1423_v63, 0.0  ;;  %v1910_v5 = vpop.f32.mrb[19].mxu0 }
 0x857   : > { %v1430_v6 = vpack.c.bf16 %v1428_v4, %v1428_v4 }
 0x859   : > { %1928 = vmatmul.mubr.bf16.vlgmr.msra.gmra.mrb[8].mxu1 %v1430_v6 }
 0x92c   : > { %v1529_v8 = vpop.f32.mrb[8].mxu1 }
 0x92d   : > { %v1535_v0 = vadd.f32 %v1529_v8, %v1429_v7  ;;  %v1929_v9 = vpop.f32.mrb[9].mxu1 }
 0x92e   : > { %v1532_v10 = vpop.f32.mrb[10].mxu1 }
 0x92f   : > { %1536 = vst.msk [vmem:[#allocation3] sm:$0xff] %vm737_vm0, %v1535_v0  ;;  %v1930_v11 = vpop.f32.mrb[11].mxu1 }
 0x936   : > { %v1540_v12 = vld [vmem:[#allocation3] sm:$0xff] }
 0x937   : > { %v1541_v14 = vadd.f32 %v1540_v12, %v1359_v57 }
 0x939   : > { %v1549_v15 = vadd.f32 %v1828_v13, %v1541_v14 }
 0x93b   : > { %v1552_v16 = vsel %vm737_vm0, %v1549_v15, 0.0 }
 0x93c   : > { %1553 = vadd.xlane.f32.xlu0 %v1552_v16 }
 0x9c9   : > { %v1554_v17 = vpop.xlane.xlu0 %1553 }
 0x9ca   : > { %v1556_v18 = vmul.f32 0.03125, %v1554_v17 }
 0x9cc   : > { %v1557_v19 = vsub.f32 %v1549_v15, %v1556_v18 }
 0x9ce   : > { %v1558_v20 = vmul.f32 %v1557_v19, %v1557_v19 }
 0x9d0   : > { %v1559_v21 = vsel %vm737_vm0, %v1558_v20, 0.0 }
 0x9d1   : > { %1560 = vadd.xlane.f32.xlu0 %v1559_v21 }
 0xa5e   : > { %v1561_v23 = vpop.xlane.xlu0 %1560 }
 0xa5f   : > { %v1562_v24 = vmul.f32 0.03125, %v1561_v23 }
 0xa61   : > { %v1563_v26 = vadd.f32 1e-05, %v1562_v24 }
 0xa63   : > { %2045 = vrsqrt.f32 %v1563_v26 }
 0xa6d   : > { %v2046_v27 = vpop.eup %2045 }
 0xa6e   : > { %v1565_v29 = vmul.f32 %v2046_v27, %v1557_v19 }
 0xa70   : > { %v1572_v30 = vmul.f32 %v1829_v28, %v1565_v29 }
 0xa72   : > { %v1579_v31 = vadd.f32 %v1830_v22, %v1572_v30 }
 0xa74   : > { %1580 = vst.msk [vmem:[%s676_s30] sm:$0xff] %vm737_vm0, %v1579_v31 }
 0xa75   : > { %2146 = shalt.err (!%p2143_p10)
}
 0xa76   : > { %s2147_s19 = scalar_lea.hbm %s2689_s2, 128  ;;  %s2151_s12 = scalar_lea.hbm %s2797_s1, 256 }
 0xa77   : > { %p2148_p13 = scmp.ne.s32.totalorder %s2689_s2, %s2147_s19  ;;  %p2152_p3 = scmp.lt.u32.totalorder %s2689_s2, %s2797_s1 }
 0xa78   : > { %p2153_p11 = scmp.lt.u32.totalorder %s2151_s12, %s2147_s19  ;;  %p2155_p4 = scmp.lt.u32.totalorder %s2147_s19, %s2689_s2 }
 0xa79   : > { %p2149_p9 = pnand %p2148_p13, %p2444_p8 }
 0xa7a   : > { %p2154_p1 = por %p2153_p11, %p2152_p3 }
 0xa7b   : > { %p2150_p7 = pneg %p2149_p9 }
 0xa7c   : > { %p2156_p2 = por %p2155_p4, %p2154_p1 }
 0xa7e   : > { %p2157_p6 = pnand %p2156_p2, %p2150_p7 }
 0xa80   : > { %2160 = shalt.err (!%p2157_p6)
}
 0xa81   : > { %1941 = dma.vmem_to_hbm [thread:$0]  (%p2444_p8), %s2691_s8, 128, %s2689_s2, %s1582_s27  }
 0xa82 PF: > { %s2798_s0 = sld [smem:[#allocation14_spill]]  ;;  %s2799_s18 = sld [smem:[#allocation15_spill]] }
 0xa83   : > { %p2801_p0 = scmp.ge.s32.totalorder %s2219_s26, 2 }
 0xa88   : > { %s1608_s13 = sand.u32 1, %s2798_s0   ;;  %p2800_p12 = scmp.ne.s32.totalorder %s2799_s18, 0 }
 0xa89   : > { %s1609_s24 = scalar_lea.sflag [#allocation6], %s1608_s13 }
 0xa8a   : > { %p1955_p5 = pnand %p2801_p0, %p2800_p12 }
 0xa8c   : > { %2194 = dma.done.wait (!%p1955_p5), %s1609_s24, 128  }
 0xa8d   : > { %2196 = vsyncadd (!%p1955_p5), %s1609_s24, 4294967168  ;;  %s33_s26 = sadd.s32 1, %s2219_s26   ;;  %s2802_s21 = smov %s2203_s22 }
 0xa8e   : > { %p30_p10 = scmp.ge.s32.totalorder %s33_s26, 4   ;;  %s2803_s22 = smov %s2207_s23 }
 0xa8f   : > { %s2804_s23 = smov %s2453_s14  ;;  %s2805_s24 = smov %s2215_s25 }
 0xa90   : > { %s2806_s25 = smov %s2808_s15  ;;  %32 = sbr.rel (!%p30_p10) target bundleno = 18 (0x12), region = 163 }
 0xa97   :  { %1614 = vsyncpa [#allocation5], 1 }
 0xa98   :  { %1616 = vsyncpa [#allocation5 + $0x1], 1 }
 0xa99   :  { %1617 = vsyncpa [#allocation8], 1 }
 0xa9a   :  { %1618 = vsyncpa [#allocation6], 1 }
 0xa9b   :  { %1620 = vsyncpa [#allocation6 + $0x1], 1 }

</bundles_post_ra>
